<compile_context>
chip_gen: v7x
topology: tpu7x:2x2x1
jax: 0.10.0
libtpu: 0.0.40
codegen_flags: <defaults>
</compile_context>

<pallas_src>
import functools

import jax
import jax.numpy as jnp
from jax.experimental import pallas as pl
from jax.experimental.pallas import tpu as pltpu


_VMEM_LIMIT = 32 * 1024 * 1024  # per-kernel scoped limit, safe on v7x (64 MiB)


# TODO(synk): PyTorch F.gelu defaults to the exact erf GELU; we use the tanh
# approximation inside the kernel (erf lowering support on Mosaic is spotty).
def _gelu(x):
    return jax.nn.gelu(x, approximate=True)


def _tile(dim, target, align):
    """Largest block size <= target that divides dim and is a multiple of
    `align`; falls back to the full dim (always a legal BlockSpec block).
    Row (M / time) dims are padded by the caller so the fallback only triggers
    on small or conv-side shapes."""
    if dim <= target:
        return dim
    t = (target // align) * align
    while t >= align:
        if dim % t == 0:
            return t
        t -= align
    return dim


def _head_group(n_heads, head_dim):
    """Heads processed per attention grid step; aims for G*head_dim == 128."""
    g = max(1, 128 // max(1, head_dim))
    g = min(g, n_heads)
    while n_heads % g != 0:
        g -= 1
    return max(1, g)


# ----------------------------- Pallas kernels -----------------------------

def _linear_kernel(x_ref, w_ref, b_ref, *rest, act, has_residual):
    """Tiled matmul + bias (+GELU) (+residual).  grid = (nm, nn, nk)."""
    if has_residual:
        r_ref, o_ref, acc_ref = rest
    else:
        o_ref, acc_ref = rest

    k = pl.program_id(2)

    @pl.when(k == 0)
    def _():
        acc_ref[...] = jnp.zeros_like(acc_ref)

    acc_ref[...] += jnp.dot(x_ref[...], w_ref[...],
                            preferred_element_type=jnp.float32)

    @pl.when(k == pl.num_programs(2) - 1)
    def _():
        y = acc_ref[...] + b_ref[...]
        if act:
            y = _gelu(y)
        if has_residual:
            y = y + r_ref[...].astype(jnp.float32)
        o_ref[...] = y.astype(o_ref.dtype)


def _conv_matmul_kernel(x_ref, w_ref, b_ref, o_ref, acc_ref, *, act):
    """k=3 Conv1d as a tap-accumulated tiled matmul.
    grid = (nm, nn, ntap, nk); tap & k are reduction ("arbitrary") axes."""
    tap = pl.program_id(2)
    k = pl.program_id(3)

    @pl.when((tap == 0) & (k == 0))
    def _():
        acc_ref[...] = jnp.zeros_like(acc_ref)

    acc_ref[...] += jnp.dot(x_ref[0], w_ref[0],
                            preferred_element_type=jnp.float32)

    @pl.when((tap == pl.num_programs(2) - 1) & (k == pl.num_programs(3) - 1))
    def _():
        y = acc_ref[...] + b_ref[...]
        if act:
            y = _gelu(y)
        o_ref[...] = y.astype(o_ref.dtype)


def _layernorm_kernel(x_ref, g_ref, b_ref, o_ref, *, eps):
    x = x_ref[...].astype(jnp.float32)
    mu = jnp.mean(x, axis=-1, keepdims=True)
    xc = x - mu
    var = jnp.mean(xc * xc, axis=-1, keepdims=True)
    y = xc * jax.lax.rsqrt(var + eps)
    o_ref[...] = (y * g_ref[...] + b_ref[...]).astype(o_ref.dtype)


def _pool_layernorm_kernel(xe_ref, xo_ref, g_ref, b_ref, o_ref, *, eps):
    # AvgPool1d(kernel=2, stride=2) over time, fused with LayerNorm(d_model)
    x = 0.5 * (xe_ref[...].astype(jnp.float32) + xo_ref[...].astype(jnp.float32))
    mu = jnp.mean(x, axis=-1, keepdims=True)
    xc = x - mu
    var = jnp.mean(xc * xc, axis=-1, keepdims=True)
    y = xc * jax.lax.rsqrt(var + eps)
    o_ref[...] = (y * g_ref[...] + b_ref[...]).astype(o_ref.dtype)


def _attn_kernel(q_ref, k_ref, v_ref, o_ref, *, scale, seq_valid, t_padded):
    """Attention with the full (padded) per-head-group K/V resident in VMEM.
    grid = (B*H//G, nq).  K/V block index only depends on the outer axis, so
    the pipeline does not re-fetch it per q tile."""
    q = q_ref[0] * scale                       # (G, tq, hd) bf16, pre-scaled
    k = k_ref[0]                               # (G, Tp, hd) bf16
    v = v_ref[0]                               # (G, Tp, hd) bf16

    s = jnp.einsum('gqd,gkd->gqk', q, k,
                   preferred_element_type=jnp.float32)      # (G, tq, Tp) f32

    if seq_valid < t_padded:                   # static: mask padded keys
        kv_pos = jax.lax.broadcasted_iota(jnp.int32, s.shape, 2)
        s = jnp.where(kv_pos < seq_valid, s, -jnp.inf)

    m = jnp.max(s, axis=-1, keepdims=True)
    p = jnp.exp(s - m)
    l = jnp.sum(p, axis=-1, keepdims=True)
    o = jnp.einsum('gqk,gkd->gqd', p.astype(v.dtype), v,
                   preferred_element_type=jnp.float32)
    inv_l = pl.reciprocal(l, approx=True)
    o_ref[0] = (o * inv_l).astype(o_ref.dtype)


# ----------------------------- wrappers ------------------------------------

def _as_bf16(x):
    return x if x.dtype == jnp.bfloat16 else x.astype(jnp.bfloat16)


def linear(x, w, b, act=False, residual=None, out_dtype=jnp.bfloat16):
    """y = act(x @ w + b) [+ residual]; tiled bf16 matmul, f32 accumulate."""
    M, K = x.shape
    N = w.shape[1]
    tm = _tile(M, 256, 16)
    tn = _tile(N, 512, 128)
    tk = _tile(K, 512, 128)
    grid = (M // tm, N // tn, K // tk)

    xb = _as_bf16(x)
    wb = _as_bf16(w)
    b2 = b.reshape(1, N).astype(jnp.float32)

    in_specs = [pl.BlockSpec((tm, tk), lambda i, j, k: (i, k)),
                pl.BlockSpec((tk, tn), lambda i, j, k: (k, j)),
                pl.BlockSpec((1, tn), lambda i, j, k: (0, j))]
    args = [xb, wb, b2]
    has_residual = residual is not None
    if has_residual:
        in_specs.append(pl.BlockSpec((tm, tn), lambda i, j, k: (i, j)))
        args.append(_as_bf16(residual))

    out_bytes = M * N * jnp.dtype(out_dtype).itemsize
    bytes_accessed = (2 * M * K + 2 * K * N + 4 * N + out_bytes
                      + (2 * M * N if has_residual else 0))
    cost = pl.CostEstimate(flops=2 * M * N * K,
                           transcendentals=(M * N if act else 0),
                           bytes_accessed=bytes_accessed)

    kernel = functools.partial(_linear_kernel, act=act,
                               has_residual=has_residual)
    return pl.pallas_call(
        kernel,
        out_shape=jax.ShapeDtypeStruct((M, N), out_dtype),
        grid=grid,
        in_specs=in_specs,
        out_specs=pl.BlockSpec((tm, tn), lambda i, j, k: (i, j)),
        scratch_shapes=[pltpu.VMEM((tm, tn), jnp.float32)],
        compiler_params=pltpu.CompilerParams(
            dimension_semantics=("parallel", "parallel", "arbitrary"),
            vmem_limit_bytes=_VMEM_LIMIT),
        cost_estimate=cost,
    )(*args)


def conv1d_gelu(x_taps, w_taps, b):
    """x_taps: (3, M, K) tap-shifted bf16 inputs, w_taps: (3, K, N) bf16.
    Returns GELU(sum_tap x_taps[tap] @ w_taps[tap] + b) as bf16."""
    ntap, M, K = x_taps.shape
    N = w_taps.shape[2]
    tm = _tile(M, 256, 16)
    tn = _tile(N, 512, 128)
    tk = _tile(K, 512, 128)
    grid = (M // tm, N // tn, ntap, K // tk)

    cost = pl.CostEstimate(flops=2 * ntap * M * N * K,
                           transcendentals=M * N,
                           bytes_accessed=2 * ntap * (M * K + K * N) + 2 * M * N)

    return pl.pallas_call(
        functools.partial(_conv_matmul_kernel, act=True),
        out_shape=jax.ShapeDtypeStruct((M, N), jnp.bfloat16),
        grid=grid,
        in_specs=[pl.BlockSpec((1, tm, tk), lambda i, j, t, k: (t, i, k)),
                  pl.BlockSpec((1, tk, tn), lambda i, j, t, k: (t, k, j)),
                  pl.BlockSpec((1, tn), lambda i, j, t, k: (0, j))],
        out_specs=pl.BlockSpec((tm, tn), lambda i, j, t, k: (i, j)),
        scratch_shapes=[pltpu.VMEM((tm, tn), jnp.float32)],
        compiler_params=pltpu.CompilerParams(
            dimension_semantics=("parallel", "parallel", "arbitrary", "arbitrary"),
            vmem_limit_bytes=_VMEM_LIMIT),
        cost_estimate=cost,
    )(_as_bf16(x_taps), _as_bf16(w_taps), b.reshape(1, N).astype(jnp.float32))


def layernorm(x, g, b, eps=1e-5):
    M, D = x.shape
    tm = _tile(M, 512, 16)
    return pl.pallas_call(
        functools.partial(_layernorm_kernel, eps=eps),
        out_shape=jax.ShapeDtypeStruct((M, D), x.dtype),
        grid=(M // tm,),
        in_specs=[pl.BlockSpec((tm, D), lambda i: (i, 0)),
                  pl.BlockSpec((1, D), lambda i: (0, 0)),
                  pl.BlockSpec((1, D), lambda i: (0, 0))],
        out_specs=pl.BlockSpec((tm, D), lambda i: (i, 0)),
        compiler_params=pltpu.CompilerParams(
            dimension_semantics=("parallel",), vmem_limit_bytes=_VMEM_LIMIT),
    )(x, g.reshape(1, D).astype(jnp.float32), b.reshape(1, D).astype(jnp.float32))


def pool_layernorm(x_even, x_odd, g, b, eps=1e-5):
    M, D = x_even.shape
    tm = _tile(M, 512, 16)
    return pl.pallas_call(
        functools.partial(_pool_layernorm_kernel, eps=eps),
        out_shape=jax.ShapeDtypeStruct((M, D), x_even.dtype),
        grid=(M // tm,),
        in_specs=[pl.BlockSpec((tm, D), lambda i: (i, 0)),
                  pl.BlockSpec((tm, D), lambda i: (i, 0)),
                  pl.BlockSpec((1, D), lambda i: (0, 0)),
                  pl.BlockSpec((1, D), lambda i: (0, 0))],
        out_specs=pl.BlockSpec((tm, D), lambda i: (i, 0)),
        compiler_params=pltpu.CompilerParams(
            dimension_semantics=("parallel",), vmem_limit_bytes=_VMEM_LIMIT),
    )(x_even, x_odd, g.reshape(1, D).astype(jnp.float32),
      b.reshape(1, D).astype(jnp.float32))


def attention(q, k, v, scale, seq_valid):
    """q,k,v: (B*H//G, G, T_padded, head_dim) bf16.  Full K/V per head-group
    stays resident in VMEM; padded keys (>= seq_valid) masked in-kernel."""
    BG, G, Tp, hd = q.shape
    tq = _tile(Tp, 256, 16)
    grid = (BG, Tp // tq)

    kernel = functools.partial(_attn_kernel, scale=scale,
                               seq_valid=seq_valid, t_padded=Tp)
    q_spec = pl.BlockSpec((1, G, tq, hd), lambda g, i: (g, 0, i, 0))
    kv_spec = pl.BlockSpec((1, G, Tp, hd), lambda g, i: (g, 0, 0, 0))
    o_spec = pl.BlockSpec((1, G, tq, hd), lambda g, i: (g, 0, i, 0))

    cost = pl.CostEstimate(flops=4 * BG * G * Tp * Tp * hd,
                           transcendentals=BG * G * Tp * Tp,
                           bytes_accessed=4 * 2 * BG * G * Tp * hd)

    return pl.pallas_call(
        kernel,
        out_shape=jax.ShapeDtypeStruct((BG, G, Tp, hd), jnp.bfloat16),
        grid=grid,
        in_specs=[q_spec, kv_spec, kv_spec],
        out_specs=o_spec,
        compiler_params=pltpu.CompilerParams(
            dimension_semantics=("parallel", "parallel"),
            vmem_limit_bytes=_VMEM_LIMIT),
        cost_estimate=cost,
    )(_as_bf16(q), _as_bf16(k), _as_bf16(v))


# ----------------------------- parameters ----------------------------------

def init_params(key, n_mels, d_model, ffn, n_layers, max_pos, llm_hidden):
    keys = iter(jax.random.split(key, 8 + 12 * n_layers))

    def nrm(shape, scale=0.02):
        return scale * jax.random.normal(next(keys), shape, dtype=jnp.float32)

    params = {
        # torch Conv1d weight layout: (out_channels, in_channels, kernel)
        'conv1_w': nrm((d_model, n_mels, 3)), 'conv1_b': nrm((d_model,)),
        'conv2_w': nrm((d_model, d_model, 3)), 'conv2_b': nrm((d_model,)),
        'pos_emb': nrm((max_pos, d_model)),
        'ln_f_g': jnp.ones((d_model,), jnp.float32),
        'ln_f_b': jnp.zeros((d_model,), jnp.float32),
        'proj_w': nrm((d_model, llm_hidden)), 'proj_b': nrm((llm_hidden,)),
        'layers': [],
    }
    for _ in range(n_layers):
        params['layers'].append({
            'ln1_g': jnp.ones((d_model,), jnp.float32),
            'ln1_b': jnp.zeros((d_model,), jnp.float32),
            'q_w': nrm((d_model, d_model)), 'q_b': nrm((d_model,)),
            'k_w': nrm((d_model, d_model)),               # k_proj has no bias
            'v_w': nrm((d_model, d_model)), 'v_b': nrm((d_model,)),
            'o_w': nrm((d_model, d_model)), 'o_b': nrm((d_model,)),
            'ln2_g': jnp.ones((d_model,), jnp.float32),
            'ln2_b': jnp.zeros((d_model,), jnp.float32),
            'fc1_w': nrm((d_model, ffn)), 'fc1_b': nrm((ffn,)),
            'fc2_w': nrm((ffn, d_model)), 'fc2_b': nrm((d_model,)),
        })
    return params


def prepare_params(params):
    """One-time packing: bf16 weights, conv (tap, Cin, Cout) layout, fused QKV."""
    d_model = params['conv1_w'].shape[0]
    zero_b = jnp.zeros((d_model,), jnp.float32)
    prep = {
        'conv1_w': jnp.transpose(params['conv1_w'], (2, 1, 0)).astype(jnp.bfloat16),
        'conv1_b': params['conv1_b'].astype(jnp.float32),
        'conv2_w': jnp.transpose(params['conv2_w'], (2, 1, 0)).astype(jnp.bfloat16),
        'conv2_b': params['conv2_b'].astype(jnp.float32),
        'pos_emb': params['pos_emb'].astype(jnp.float32),
        'ln_f_g': params['ln_f_g'].astype(jnp.float32),
        'ln_f_b': params['ln_f_b'].astype(jnp.float32),
        'proj_w': params['proj_w'].astype(jnp.bfloat16),
        'proj_b': params['proj_b'].astype(jnp.float32),
        'layers': [],
    }
    for lp in params['layers']:
        prep['layers'].append({
            'ln1_g': lp['ln1_g'].astype(jnp.float32),
            'ln1_b': lp['ln1_b'].astype(jnp.float32),
            'qkv_w': jnp.concatenate([lp['q_w'], lp['k_w'], lp['v_w']],
                                     axis=1).astype(jnp.bfloat16),
            'qkv_b': jnp.concatenate([lp['q_b'], zero_b, lp['v_b']],
                                     axis=0).astype(jnp.float32),
            'o_w': lp['o_w'].astype(jnp.bfloat16),
            'o_b': lp['o_b'].astype(jnp.float32),
            'ln2_g': lp['ln2_g'].astype(jnp.float32),
            'ln2_b': lp['ln2_b'].astype(jnp.float32),
            'fc1_w': lp['fc1_w'].astype(jnp.bfloat16),
            'fc1_b': lp['fc1_b'].astype(jnp.float32),
            'fc2_w': lp['fc2_w'].astype(jnp.bfloat16),
            'fc2_b': lp['fc2_b'].astype(jnp.float32),
        })
    return prep


# ----------------------------- model ---------------------------------------

def qwen2audio_forward(input_features, prep, n_heads):
    # layout: input_features is (B, n_mels, T) (PyTorch NCW); internally (B, T, C)
    B, C, T0 = input_features.shape
    x = jnp.transpose(input_features, (0, 2, 1)).astype(jnp.bfloat16)  # (B, T0, C)

    # ---- conv1 (k=3, stride=1, pad=1) + GELU : tap-accumulated tiled matmul ----
    # TODO(synk): tap-shifted copies are XLA glue (~3x conv-input HBM copy);
    # convs are ~1% of FLOPs so left as-is instead of pl.Element index tricks.
    xp = jnp.pad(x, ((0, 0), (1, 1), (0, 0)))
    taps1 = jnp.stack([xp[:, t:t + T0, :] for t in range(3)], axis=0)
    taps1 = taps1.reshape(3, B * T0, C)
    w1 = prep['conv1_w']                                     # (3, C, D)
    D = w1.shape[2]
    h = conv1d_gelu(taps1, w1, prep['conv1_b']).reshape(B, T0, D)

    # ---- conv2 (k=3, stride=2, pad=1) + GELU ----
    T1 = (T0 + 2 - 3) // 2 + 1
    hp = jnp.pad(h, ((0, 0), (1, 1), (0, 0)))
    taps2 = jnp.stack([hp[:, t:t + 2 * T1:2, :] for t in range(3)], axis=0)
    taps2 = taps2.reshape(3, B * T1, D)
    h = conv1d_gelu(taps2, prep['conv2_w'], prep['conv2_b']).reshape(B, T1, D)

    # ---- positional embedding (f32 add, once) ----
    seq = T1
    h = (h.astype(jnp.float32) + prep['pos_emb'][:seq][None]).astype(jnp.bfloat16)

    # ---- pad time to a multiple of 128 so every kernel tiles cleanly ----
    t_pad = ((seq + 127) // 128) * 128
    if t_pad != seq:
        h = jnp.pad(h, ((0, 0), (0, t_pad - seq), (0, 0)))
    M = B * t_pad
    h = h.reshape(M, D)

    head_dim = D // n_heads
    scale = head_dim ** -0.5
    G = _head_group(n_heads, head_dim)
    BG = B * n_heads // G

    def split_heads(t):   # (M, D) -> (B*H//G, G, t_pad, hd)
        t = t.reshape(B, t_pad, n_heads, head_dim)
        return jnp.transpose(t, (0, 2, 1, 3)).reshape(BG, G, t_pad, head_dim)

    for lp in prep['layers']:
        # ---- self-attention block (pre-LN), fused QKV projection ----
        residual = h
        hn = layernorm(residual, lp['ln1_g'], lp['ln1_b'])
        qkv = linear(hn, lp['qkv_w'], lp['qkv_b'])                    # (M, 3D) bf16
        q, k, v = qkv[:, :D], qkv[:, D:2 * D], qkv[:, 2 * D:]
        attn = attention(split_heads(q), split_heads(k), split_heads(v),
                         scale, seq)
        attn = jnp.transpose(attn.reshape(B, n_heads, t_pad, head_dim),
                             (0, 2, 1, 3)).reshape(M, D)
        h = linear(attn, lp['o_w'], lp['o_b'], residual=residual)

        # ---- feed-forward block (pre-LN) ----
        residual = h
        hn = layernorm(h, lp['ln2_g'], lp['ln2_b'])
        ff = linear(hn, lp['fc1_w'], lp['fc1_b'], act=True)
        h = linear(ff, lp['fc2_w'], lp['fc2_b'], residual=residual)

    # ---- drop padded rows, then avg_pooler (AvgPool1d(2)) fused with LN ----
    h = h.reshape(B, t_pad, D)[:, :seq]
    Tp = seq // 2                       # matches torch AvgPool1d floor behavior
    x_even = h[:, 0:2 * Tp:2, :].reshape(B * Tp, D)
    x_odd = h[:, 1:2 * Tp:2, :].reshape(B * Tp, D)
    h = pool_layernorm(x_even, x_odd, prep['ln_f_g'], prep['ln_f_b'])

    # ---- multi_modal_projector (Linear d_model -> llm hidden), f32 out ----
    out = linear(h, prep['proj_w'], prep['proj_b'], out_dtype=jnp.float32)
    return out.reshape(B, Tp, -1)


if __name__ == "__main__":
    # small synthetic config (real model: n_mels=128, T=3000, d_model=1280, ...)
    B, N_MELS, T0 = 1, 32, 32
    D_MODEL, FFN, N_LAYERS, N_HEADS = 64, 128, 2, 4
    LLM_HIDDEN = 96
    MAX_POS = 64

    key = jax.random.PRNGKey(0)
    pkey, xkey = jax.random.split(key)
    params = init_params(pkey, N_MELS, D_MODEL, FFN, N_LAYERS, MAX_POS, LLM_HIDDEN)
    prep = prepare_params(params)

    # (B, n_mels, T)  -- PyTorch Conv1d NCW layout
    input_features = jax.random.normal(xkey, (B, N_MELS, T0), dtype=jnp.float32)

    out = qwen2audio_forward(input_features, prep, n_heads=N_HEADS)
    out = jax.block_until_ready(out)
    assert out.shape == (B, T0 // 4, LLM_HIDDEN), out.shape
    assert bool(jnp.all(jnp.isfinite(out)))
    print("KERNEL_OK")
</pallas_src>

<mosaic_0001>
module attributes {stable_mosaic.version = 11 : i64} {
  func.func @_conv_matmul_kernel(%arg0: i32, %arg1: i32, %arg2: i32, %arg3: i32, %arg4: memref<1x32x32xbf16, #tpu.memory_space<vmem>>, %arg5: memref<1x32x64xbf16, #tpu.memory_space<vmem>>, %arg6: memref<1x64xf32, #tpu.memory_space<vmem>>, %arg7: memref<32x64xbf16, #tpu.memory_space<vmem>>, %arg8: memref<32x64xf32, #tpu.memory_space<vmem>>) attributes {dimension_semantics = [#tpu.dimension_semantics<parallel>, #tpu.dimension_semantics<parallel>, #tpu.dimension_semantics<arbitrary>, #tpu.dimension_semantics<arbitrary>], iteration_bounds = array<i64: 1, 1, 3, 1>, scalar_prefetch = 0 : i64, scratch_operands = 1 : i64, tpu.core_type = #tpu.core_type<tc>, window_params = [{transform_indices = @transform_0, window_bounds = array<i64: 1, 32, 32>}, {transform_indices = @transform_1, window_bounds = array<i64: 1, 32, 64>}, {transform_indices = @transform_2, window_bounds = array<i64: 1, 64>}, {transform_indices = @transform_3, window_bounds = array<i64: 32, 64>}]} {
    %c0_i32 = arith.constant 0 : i32
    %0 = arith.cmpi eq, %arg2, %c0_i32 : i32
    %c0_i32_0 = arith.constant 0 : i32
    %1 = arith.cmpi eq, %arg3, %c0_i32_0 : i32
    %2 = arith.andi %0, %1 : i1
    %3 = arith.extui %2 : i1 to i32
    %c0_i32_1 = arith.constant 0 : i32
    %4 = arith.cmpi ne, %3, %c0_i32_1 : i32
    scf.if %4 {
      %cst_13 = arith.constant 0.000000e+00 : f32
      %18 = vector.broadcast %cst_13 : f32 to vector<32x64xf32>
      %c0_14 = arith.constant 0 : index
      %c0_15 = arith.constant 0 : index
      %19 = vector.load %arg8[%c0_14, %c0_15] : memref<32x64xf32, #tpu.memory_space<vmem>>, vector<32x64xf32>
      tpu.vector_store %arg8[%c0_14, %c0_15], %18 {strides = array<i32>} : memref<32x64xf32, #tpu.memory_space<vmem>>, vector<32x64xf32>,
    } else {
    }
    %c0 = arith.constant 0 : index
    %c0_2 = arith.constant 0 : index
    %5 = vector.load %arg8[%c0, %c0_2] : memref<32x64xf32, #tpu.memory_space<vmem>>, vector<32x64xf32>
    %c0_3 = arith.constant 0 : index
    %c0_4 = arith.constant 0 : index
    %c0_5 = arith.constant 0 : index
    %6 = vector.load %arg4[%c0_3, %c0_4, %c0_5] : memref<1x32x32xbf16, #tpu.memory_space<vmem>>, vector<1x32x32xbf16>
    %7 = vector.shape_cast %6 : vector<1x32x32xbf16> to vector<32x32xbf16>
    %c0_6 = arith.constant 0 : index
    %c0_7 = arith.constant 0 : index
    %c0_8 = arith.constant 0 : index
    %8 = vector.load %arg5[%c0_6, %c0_7, %c0_8] : memref<1x32x64xbf16, #tpu.memory_space<vmem>>, vector<1x32x64xbf16>
    %9 = vector.shape_cast %8 : vector<1x32x64xbf16> to vector<32x64xbf16>
    %cst = arith.constant dense<0.000000e+00> : vector<32x64xf32>
    %10 = tpu.matmul %7, %9, %cst {dimension_numbers = #tpu.dot_dimension_numbers<[1], [0], [0], [1], [0, 0, 1, 1], [], []>} : vector<32x32xbf16>, vector<32x64xbf16>, vector<32x64xf32> -> vector<32x64xf32>
    %11 = arith.addf %5, %10 : vector<32x64xf32>
    %c0_9 = arith.constant 0 : index
    %c0_10 = arith.constant 0 : index
    %12 = vector.load %arg8[%c0_9, %c0_10] : memref<32x64xf32, #tpu.memory_space<vmem>>, vector<32x64xf32>
    tpu.vector_store %arg8[%c0_9, %c0_10], %11 {strides = array<i32>} : memref<32x64xf32, #tpu.memory_space<vmem>>, vector<32x64xf32>,
    %c2_i32 = arith.constant 2 : i32
    %13 = arith.cmpi eq, %arg2, %c2_i32 : i32
    %c0_i32_11 = arith.constant 0 : i32
    %14 = arith.cmpi eq, %arg3, %c0_i32_11 : i32
    %15 = arith.andi %13, %14 : i1
    %16 = arith.extui %15 : i1 to i32
    %c0_i32_12 = arith.constant 0 : i32
    %17 = arith.cmpi ne, %16, %c0_i32_12 : i32
    scf.if %17 {
      %c0_13 = arith.constant 0 : index
      %c0_14 = arith.constant 0 : index
      %18 = vector.load %arg8[%c0_13, %c0_14] : memref<32x64xf32, #tpu.memory_space<vmem>>, vector<32x64xf32>
      %c0_15 = arith.constant 0 : index
      %c0_16 = arith.constant 0 : index
      %19 = vector.load %arg6[%c0_15, %c0_16] : memref<1x64xf32, #tpu.memory_space<vmem>>, vector<1x64xf32>
      %20 = vector.broadcast %19 : vector<1x64xf32> to vector<32x64xf32>
      %21 = arith.addf %18, %20 : vector<32x64xf32>
      %22 = arith.mulf %21, %21 : vector<32x64xf32>
      %23 = arith.mulf %21, %22 : vector<32x64xf32>
      %cst_17 = arith.constant 4.471500e-02 : f32
      %24 = vector.broadcast %cst_17 : f32 to vector<32x64xf32>
      %25 = arith.mulf %24, %23 : vector<32x64xf32>
      %26 = arith.addf %21, %25 : vector<32x64xf32>
      %cst_18 = arith.constant 0.797884583 : f32
      %27 = vector.broadcast %cst_18 : f32 to vector<32x64xf32>
      %28 = arith.mulf %27, %26 : vector<32x64xf32>
      %29 = math.tanh %28 : vector<32x64xf32>
      %cst_19 = arith.constant 1.000000e+00 : f32
      %30 = vector.broadcast %cst_19 : f32 to vector<32x64xf32>
      %31 = arith.addf %30, %29 : vector<32x64xf32>
      %cst_20 = arith.constant 5.000000e-01 : f32
      %32 = vector.broadcast %cst_20 : f32 to vector<32x64xf32>
      %33 = arith.mulf %32, %31 : vector<32x64xf32>
      %34 = arith.mulf %21, %33 : vector<32x64xf32>
      %35 = arith.truncf %34 : vector<32x64xf32> to vector<32x64xbf16>
      %c0_21 = arith.constant 0 : index
      %c0_22 = arith.constant 0 : index
      %36 = vector.load %arg7[%c0_21, %c0_22] : memref<32x64xbf16, #tpu.memory_space<vmem>>, vector<32x64xbf16>
      tpu.vector_store %arg7[%c0_21, %c0_22], %35 {strides = array<i32>} : memref<32x64xbf16, #tpu.memory_space<vmem>>, vector<32x64xbf16>,
    } else {
    }
    return
  }
  func.func @transform_0(%arg0: i32, %arg1: i32, %arg2: i32, %arg3: i32) -> (i32, i32, i32) {
    %c0_i32 = arith.constant 0 : i32
    return %arg2, %arg0, %arg3 : i32, i32, i32
  }
  func.func @transform_1(%arg0: i32, %arg1: i32, %arg2: i32, %arg3: i32) -> (i32, i32, i32) {
    %c0_i32 = arith.constant 0 : i32
    return %arg2, %arg3, %arg1 : i32, i32, i32
  }
  func.func @transform_2(%arg0: i32, %arg1: i32, %arg2: i32, %arg3: i32) -> (i32, i32) {
    %c0_i32 = arith.constant 0 : i32
    %c0_i32_0 = arith.constant 0 : i32
    return %c0_i32, %arg1 : i32, i32
  }
  func.func @transform_3(%arg0: i32, %arg1: i32, %arg2: i32, %arg3: i32) -> (i32, i32) {
    %c0_i32 = arith.constant 0 : i32
    return %arg0, %arg1 : i32, i32
  }
}

</mosaic_0001>

<bundles_post_ra>
// kernel: tpu_custom_call.1
= control target key start
LH: loop header
LB: loop body
LE: loop exit
PB: predicated region body
PF: predicated region fallthrough
CT: control target
= control target key end

     0   :  { %8 = vsyncpa [#allocation4], 0  ;;  %s1118_s0 = inlined_call_operand.hbm [shape: bf16[3,32,32], index: 0, kind: input, shape index: {}]   ;;  %s1119_s1 = inlined_call_operand.hbm [shape: bf16[3,32,64], index: 1, kind: input, shape index: {}]   ;;  %s1120_s2 = inlined_call_operand.vmem [shape: f32[1,64], index: 2, kind: input, shape index: {}]   ;;  %s1121_s3 = inlined_call_operand.hbm [shape: bf16[32,64], index: 3, kind: output, shape index: {}]  }
   0x1   :  { %10 = vsyncpa [#allocation4 + $0x1], 0 }
   0x2   :  { %11 = vsyncpa [#allocation7], 0 }
   0x3   :  { %13 = vsyncpa [#allocation7 + $0x1], 0 }
   0x4   :  { %14 = vsyncpa [#allocation5], 0  ;;  %s902_s12 = smov 0   ;;  %s904_s13 = smov 0  }
   0x5   :  { %s906_s14 = smov 0   ;;  %s908_s15 = smov 0  }
   0x6   :  { %s910_s16 = smov 0   ;;  %s912_s17 = smov 0  }
   0x7 LB: > { %s594_s18 = sadd.s32 4294967295, %s872_s17   ;;  %s38_s19 = sadd.s32 1, %s868_s16  ;;  %s872_s17 = sphi %s912_s17, %s20_s17   ;;  %s868_s16 = sphi %s910_s16, %s1133_s16   ;;  %s864_s15 = sphi %s908_s15, %s1132_s15   ;;  %s860_s14 = sphi %s906_s14, %s1131_s14   ;;  %s856_s13 = sphi %s904_s13, %s1130_s13   ;;  %s852_s12 = sphi %s902_s12, %s1129_s12  }
   0x8   : > { %p40_p0 = scmp.ge.s32.totalorder %s38_s19, 3  ;;  %s57_s20 = sadd.s32 1, %s860_s14 }
   0x9   : > { %p64_p1 = scmp.ne.s32.totalorder %s860_s14, %s856_s13  ;;  %p65_p2 = scmp.eq.s32.totalorder %s872_s17, 0 }
   0xa   : > { %s1135_s19 = smov (%p40_p0, %s38_s19), 0  ;;  %p70_p4 = scmp.ne.s32.totalorder %s856_s13, %s852_s12 }
   0xb   : > { %p938_p3 = por %p65_p2, %p64_p1  ;;  %s50_s22 = ssub.s32 %s868_s16, %s1135_s19 }
   0xc   : > { %p71_p5 = scmp.eq.s32.totalorder %s594_s18, 0  ;;  %p55_p6 = scmp.eq.s32.totalorder %s50_s22, 0 }
   0xd   : > { %p659_p8 = scmp.lt.s32.totalorder %s872_s17, 3  ;;  %s956_s25 = sand.u32 1, %s860_s14  }
   0xe   : > { %p947_p7 = por %p71_p5, %p70_p4  ;;  %s624_s26 = sshll.u32 %s868_s16, 8 }
   0xf   : > { %s953_s24 = scalar_select %p55_p6, %s860_s14, %s57_s20  }
  0x10   : > { %s1124_s23 = scalar_select %p947_p7, 1, 0 }
  0x11   : > { %s598_s27 = sshll.u32 %s956_s25, 4  ;;  %s965_s30 = scalar_lea.hbm %s1118_s0, %s624_s26 }
  0x12   : > { %s188_s4 = scalar_lea.vmem [#allocation3], %s598_s27  ;;  %p971_p9 = pnand %p659_p8, %p938_p3 }
  0x13   : > { %s198_s5 = sshll.u32 %s188_s4, 4  ;;  %s185_s7 = scalar_lea.sflag [#allocation4], %s956_s25  ;;  %s975_s5 = int_to_ptr.vmem [resolvable:$true] %s198_s5 }
  0x14   : > { %s728_s8 = scalar_lea.hbm %s965_s30, 256  ;;  %p730_p11 = pneg %p971_p9 }
  0x15   : > { %p729_p10 = scmp.ne.s32.totalorder %s965_s30, %s728_s8  ;;  %s733_s11 = scalar_lea.hbm %s1118_s0, 768 }
  0x16   : > { %p734_p0 = scmp.lt.u32.totalorder %s965_s30, %s1118_s0  ;;  %p735_p1 = scmp.lt.u32.totalorder %s733_s11, %s728_s8 }
  0x17   : > { %p731_p12 = pnand %p730_p11, %p729_p10  ;;  %p737_p3 = scmp.lt.u32.totalorder %s728_s8, %s965_s30 }
  0x18   : > { %p736_p2 = por %p735_p1, %p734_p0 }
  0x19   : > { %p732_p13 = pneg %p731_p12 }
  0x1a   : > { %p738_p4 = por %p737_p3, %p736_p2 }
  0x1c   : > { %p739_p5 = pnand %p738_p4, %p732_p13 }
  0x1e   : > { %742 = shalt.err (!%p739_p5)
}
  0x1f   : > { %s743_s21 = scalar_lea.vmem %s975_s5, 256  ;;  %s874_s22 = smov [#allocation3]  }
  0x20   : > { %p744_p6 = scmp.ne.s32.totalorder %s975_s5, %s743_s21  ;;  %s748_s28 = sshll.u32 %s874_s22, 4  ;;  %s749_s28 = int_to_ptr.vmem [resolvable:$false] %s748_s28 }
  0x21   : > { %s750_s29 = scalar_lea.vmem %s749_s28, 512  ;;  %p751_p12 = scmp.lt.s32.totalorder %s975_s5, %s749_s28 }
  0x22   : > { %p746_p8 = pnand %p744_p6, %p730_p11  ;;  %p752_p0 = scmp.lt.s32.totalorder %s750_s29, %s743_s21 }
  0x24   : > { %p747_p10 = pneg %p746_p8  ;;  %p753_p1 = por %p752_p0, %p751_p12 }
  0x26   : > { %p754_p2 = pnand %p753_p1, %p747_p10 }
  0x28   : > { %757 = shalt.err (!%p754_p2)
}
  0x29   : > { %s875_s4 = smov 64   ;;  %s876_s8 = smov 4  }
  0x2a   : > { %655 = dma.hbm_to_vmem [thread:$0]  (!%p971_p9), %s965_s30, 256, %s975_s5, %s185_s7, %s875_s4, %s875_s4, %s876_s8  }
  0x2b   : > { %p604_p13 = scmp.ge.s32.totalorder %s872_s17, 1  ;;  %p230_p3 = scmp.lt.s32.totalorder %s872_s17, 4 }
  0x2c   : > { %s1019_s12 = scalar_lea.hbm %s1119_s1, %s624_s26  ;;  %s212_s20 = scalar_lea.vmem [#allocation6], %s598_s27 }
  0x2d   : > { %p1010_p4 = pnand %p604_p13, %p230_p3  ;;  %s222_s21 = sshll.u32 %s212_s20, 4  ;;  %s1023_s21 = int_to_ptr.vmem [resolvable:$true] %s222_s21 }
  0x2e   : > { %s209_s30 = scalar_lea.sflag [#allocation7], %s956_s25  ;;  %s758_s5 = scalar_lea.hbm %s1019_s12, 256 }
  0x2f   : > { %p759_p5 = scmp.ne.s32.totalorder %s1019_s12, %s758_s5  ;;  %s763_s26 = scalar_lea.hbm %s1119_s1, 768 }
  0x30   : > { %p764_p10 = scmp.lt.u32.totalorder %s1019_s12, %s1119_s1  ;;  %p765_p12 = scmp.lt.u32.totalorder %s763_s26, %s758_s5 }
  0x31   : > { %p761_p6 = pnand %p759_p5, %p730_p11  ;;  %p767_p1 = scmp.lt.u32.totalorder %s758_s5, %s1019_s12 }
  0x32   : > { %p766_p0 = por %p765_p12, %p764_p10 }
  0x33   : > { %p762_p8 = pneg %p761_p6 }
  0x34   : > { %p768_p2 = por %p767_p1, %p766_p0 }
  0x36   : > { %p769_p13 = pnand %p768_p2, %p762_p8 }
  0x38   : > { %772 = shalt.err (!%p769_p13)
}
  0x39   : > { %s773_s27 = scalar_lea.vmem %s1023_s21, 256  ;;  %s877_s10 = smov [#allocation6]  }
  0x3a   : > { %p774_p3 = scmp.ne.s32.totalorder %s1023_s21, %s773_s27  ;;  %s778_s11 = sshll.u32 %s877_s10, 4  ;;  %s779_s11 = int_to_ptr.vmem [resolvable:$false] %s778_s11 }
  0x3b   : > { %s780_s20 = scalar_lea.vmem %s779_s11, 512  ;;  %p781_p7 = scmp.lt.s32.totalorder %s1023_s21, %s779_s11 }
  0x3c   : > { %p776_p5 = pnand %p774_p3, %p730_p11  ;;  %p782_p10 = scmp.lt.s32.totalorder %s780_s20, %s773_s27 }
  0x3e   : > { %p777_p6 = pneg %p776_p5  ;;  %p783_p12 = por %p782_p10, %p781_p7 }
  0x40   : > { %p784_p0 = pnand %p783_p12, %p777_p6 }
  0x42   : > { %787 = shalt.err (!%p784_p0)
}
  0x43   : > { %658 = dma.hbm_to_vmem [thread:$0]  (!%p971_p9), %s1019_s12, 256, %s1023_s21, %s209_s30, %s875_s4, %s875_s4, %s876_s8  }
  0x44   : > { %234 = sbr.rel (%p1010_p4) target bundleno = 381 (0x17d), region = 32  ;;  %s236_s5 = sand.u32 (!%p1010_p4), 1, %s856_s13  }
  0x45   : > { %s605_s7 = sshll.u32 (!%p1010_p4), %s236_s5, 4  ;;  %s237_s22 = scalar_lea.sflag (!%p1010_p4), [#allocation4], %s236_s5 }
  0x46   : > { %s240_s26 = scalar_lea.vmem (!%p1010_p4), [#allocation3], %s605_s7  ;;  %p1127_p7 = scmp.ne.s32.totalorder (!%p1010_p4), %s1124_s23, 0 }
  0x4b   : > { %839 = dma.done.wait (%p1127_p7), %s237_s22, 256  }
  0x4c   : > { %841 = vsyncadd (%p1127_p7), %s237_s22, 4294967040  ;;  %s246_s6 = scalar_lea.sflag [#allocation7], %s236_s5  ;;  %s249_s25 = scalar_lea.vmem [#allocation6], %s605_s7 }
  0x4d   : > { %843 = dma.done.wait (%p1127_p7), %s246_s6, 256  }
  0x4e   : > { %845 = vsyncadd (%p1127_p7), %s246_s6, 4294967040  ;;  %p282_p9 = scmp.eq.s32.totalorder %s864_s15, 0 }
  0x4f   : > { %vm288_vm0 = vcmask (%p282_p9), 523264   ;;  %v878_v0 = vmov (%p282_p9), 0.0  }
  0x50   : > { %287 = sbr.rel (!%p282_p9) target bundleno = 87 (0x57), region = 44  ;;  %289 = vst.msk [vmem:[#allocation2] sm:$0xff] (%p282_p9), %vm288_vm0, %v878_v0  ;;  %290 = vst.msk [vmem:[#allocation2 + $0x8] sm:$0xff] (%p282_p9), %vm288_vm0, %v878_v0 }
  0x51   : > { %291 = vst.msk [vmem:[#allocation2 + $0x10] sm:$0xff] (%p282_p9), %vm288_vm0, %v878_v0  ;;  %292 = vst.msk [vmem:[#allocation2 + $0x18] sm:$0xff] (%p282_p9), %vm288_vm0, %v878_v0 }
  0x57 PF: > { %v716_v1 = vld [vmem:[%s249_s25] sm:$0xff]   ;;  %v717_v2 = vld [vmem:[%s249_s25 + $0x8] sm:$0xff]   ;;  %vm327_vm1 = vcmask 261120   ;;  %p392_p11 = scmp.eq.s32.totalorder %s864_s15, 2  ;;  %vm387_vm2 = vcmask 523264  }
  0x58   : > { %636 = vmatprep.subr.bf16.mxu0 %v716_v1  ;;  %v718_v3 = vld [vmem:[%s240_s26] sm:$0xff]   ;;  %v719_v4 = vld [vmem:[%s240_s26 + $0x8] sm:$0xff]   ;;  %vm464_vm3 = vcmask (%p392_p11), 519168  }
  0x59   : > { %637 = vmatpush3.bf16.msra.mxu0 %v716_v1  ;;  %640 = vmatprep.mubr.msk.bf16.mxu0 %vm327_vm1, %v718_v3  ;;  %v295_v5 = vld [vmem:[#allocation2 + $0x10] sm:$0xff]  ;;  %v293_v6 = vld [vmem:[#allocation2] sm:$0xff]  ;;  %v296_v8 = vld [vmem:[#allocation2 + $0x18] sm:$0xff] }
  0x5a   : > { %638 = vmatprep.subr.bf16.mxu0 %v717_v2  ;;  %v294_v11 = vld [vmem:[#allocation2 + $0x8] sm:$0xff]  ;;  %v615_v18 = vld [vmem:[%s1120_s2] ss:$0 sm:$0xff] (%p392_p11) }
  0x5d   : > { %639 = vmatpush3.bf16.msra.mxu0 %v717_v2 }
  0x60   : > { %641 = vmatmul.mubr.msk.bf16.vlgmr.msra.gmra.mrb[0].mxu0 %vm327_vm1, %v719_v4 }
 0x133   : > { %v642_v7 = vpop.f32.mrb[0].mxu0  ;;  %396 = sbr.rel (!%p392_p11) target bundleno = 355 (0x163), region = 48 }
 0x134   : > { %v385_v9 = vadd.f32 %v642_v7, %v295_v5  ;;  %v368_v10 = vpop.f32.mrb[1].mxu0 }
 0x135   : > { %v383_v12 = vadd.f32 %v368_v10, %v293_v6  ;;  %v643_v13 = vpop.f32.mrb[2].mxu0 }
 0x136   : > { %390 = vst.msk [vmem:[#allocation2 + $0x10] sm:$0xff] %vm387_vm2, %v385_v9  ;;  %v386_v14 = vadd.f32 %v643_v13, %v296_v8  ;;  %v371_v15 = vpop.f32.mrb[3].mxu0 }
 0x137   : > { %388 = vst.msk [vmem:[#allocation2] sm:$0xff] %vm387_vm2, %v383_v12  ;;  %v384_v16 = vadd.f32 %v371_v15, %v294_v11 }
 0x138   : > { %391 = vst.msk [vmem:[#allocation2 + $0x18] sm:$0xff] %vm387_vm2, %v386_v14 }
 0x139   : > { %389 = vst.msk [vmem:[#allocation2 + $0x8] sm:$0xff] %vm387_vm2, %v384_v16 }
 0x13d   : > { %v399_v22 = vld [vmem:[#allocation2 + $0x10] sm:$0xff] }
 0x13e   : > { %v397_v17 = vld [vmem:[#allocation2] sm:$0xff]  ;;  %v410_v24 = vadd.f32 %v615_v18, %v399_v22 }
 0x13f   : > { %v408_v20 = vadd.f32 %v615_v18, %v397_v17  ;;  %v400_v23 = vld [vmem:[#allocation2 + $0x18] sm:$0xff] }
 0x140   : > { %v398_v19 = vld [vmem:[#allocation2 + $0x8] sm:$0xff]  ;;  %v411_v25 = vadd.f32 %v615_v18, %v400_v23  ;;  %v414_v28 = vmul.f32 %v410_v24, %v410_v24 }
 0x141   : > { %v409_v21 = vadd.f32 %v615_v18, %v398_v19  ;;  %v412_v26 = vmul.f32 %v408_v20, %v408_v20 }
 0x142   : > { %v415_v29 = vmul.f32 %v411_v25, %v411_v25  ;;  %v418_v32 = vmul.f32 %v414_v28, %v410_v24 }
 0x143   : > { %v413_v27 = vmul.f32 %v409_v21, %v409_v21  ;;  %v416_v30 = vmul.f32 %v412_v26, %v408_v20 }
 0x144   : > { %v419_v33 = vmul.f32 %v415_v29, %v411_v25  ;;  %v422_v36 = vmul.f32 0.044715, %v418_v32 }
 0x145   : > { %v417_v31 = vmul.f32 %v413_v27, %v409_v21  ;;  %v420_v34 = vmul.f32 0.044715, %v416_v30 }
 0x146   : > { %v423_v37 = vmul.f32 0.044715, %v419_v33  ;;  %v426_v40 = vadd.f32 %v422_v36, %v410_v24 }
 0x147   : > { %v421_v35 = vmul.f32 0.044715, %v417_v31  ;;  %v424_v38 = vadd.f32 %v420_v34, %v408_v20 }
 0x148   : > { %v427_v41 = vadd.f32 %v423_v37, %v411_v25  ;;  %v430_v44 = vmul.f32 0.7978846, %v426_v40 }
 0x149   : > { %v425_v39 = vadd.f32 %v421_v35, %v409_v21  ;;  %v428_v42 = vmul.f32 0.7978846, %v424_v38 }
 0x14a   : > { %v431_v45 = vmul.f32 0.7978846, %v427_v41 }
 0x14b   : > { %v429_v43 = vmul.f32 0.7978846, %v425_v39  ;;  %720 = vtanh.f32 %v428_v42 }
 0x14d   : > { %722 = vtanh.f32 %v429_v43 }
 0x14e   : > { %724 = vtanh.f32 %v430_v44 }
 0x14f   : > { %726 = vtanh.f32 %v431_v45 }
 0x155   : > { %v721_v46 = vpop.eup %720 }
 0x156   : > { %v436_v48 = vadd.f32 1.0, %v721_v46 }
 0x157   : > { %v723_v47 = vpop.eup %722 }
 0x158   : > { %v725_v49 = vpop.eup %724  ;;  %v437_v50 = vadd.f32 1.0, %v723_v47  ;;  %v440_v52 = vmul.f32 0.5, %v436_v48 }
 0x159   : > { %v727_v51 = vpop.eup %726  ;;  %v438_v53 = vadd.f32 1.0, %v725_v49 }
 0x15a   : > { %v441_v54 = vmul.f32 0.5, %v437_v50  ;;  %v439_v55 = vadd.f32 1.0, %v727_v51  ;;  %v444_v56 = vmul.f32 %v440_v52, %v408_v20 }
 0x15b   : > { %v442_v57 = vmul.f32 0.5, %v438_v53 }
 0x15c   : > { %v445_v58 = vmul.f32 %v441_v54, %v409_v21  ;;  %v443_v59 = vmul.f32 0.5, %v439_v55  ;;  %v628_v60 = vpack.c.bf16 %v444_v56, %v444_v56 }
 0x15d   : > { %v446_v61 = vmul.f32 %v442_v57, %v410_v24 }
 0x15e   : > { %v629_v62 = vpack.c.bf16 %v445_v58, %v445_v58  ;;  %v447_v63 = vmul.f32 %v443_v59, %v411_v25  ;;  %465 = vst.msk [vmem:[#allocation8] sm:$0xf] %vm464_vm3, %v628_v60 }
 0x15f   : > { %v630_v0 = vpack.c.bf16 %v446_v61, %v446_v61 }
 0x160   : > { %466 = vst.msk [vmem:[#allocation8 + $0x4] sm:$0xf] %vm464_vm3, %v629_v62  ;;  %v631_v1 = vpack.c.bf16 %v447_v63, %v447_v63 }
 0x161   : > { %467 = vst.msk [vmem:[#allocation8 + $0x8] sm:$0xf] %vm464_vm3, %v630_v0 }
 0x162   : > { %468 = vst.msk [vmem:[#allocation8 + $0xc] sm:$0xf] %vm464_vm3, %v631_v1 }
 0x163 PF: > { %p1074_p4 = scmp.eq.s32.totalorder %s594_s18, 2  ;;  %s879_s8 = smov [#allocation8]  }
 0x164   : > { %s479_s9 = sshll.u32 %s879_s8, 4  ;;  %s480_s9 = int_to_ptr.vmem [resolvable:$true] %s479_s9 }
 0x165   : > { %s788_s12 = scalar_lea.vmem %s480_s9, 256  ;;  %p795_p13 = scmp.lt.s32.totalorder %s480_s9, %s480_s9 }
 0x166   : > { %p789_p8 = scmp.ne.s32.totalorder %s480_s9, %s788_s12  ;;  %p796_p3 = scmp.lt.s32.totalorder %s788_s12, %s788_s12 }
 0x168   : > { %p790_p1 = pnand %p789_p8, %p1074_p4  ;;  %p797_p5 = por %p796_p3, %p795_p13 }
 0x16a   : > { %p791_p2 = pneg %p790_p1 }
 0x16c   : > { %p798_p6 = pnand %p797_p5, %p791_p2 }
 0x16e   : > { %801 = shalt.err (!%p798_p6)
}
 0x16f   : > { %s802_s18 = scalar_lea.hbm %s1121_s3, 256 }
 0x170   : > { %p803_p10 = scmp.ne.s32.totalorder %s1121_s3, %s802_s18  ;;  %p808_p7 = scmp.lt.u32.totalorder %s802_s18, %s1121_s3 }
 0x172   : > { %p804_p12 = pnand %p803_p10, %p1074_p4 }
 0x174   : > { %p805_p0 = pneg %p804_p12 }
 0x176   : > { %p810_p9 = pnand %p808_p7, %p805_p0 }
 0x178   : > { %813 = shalt.err (!%p810_p9)
}
 0x179   : > { %s880_s11 = smov 64   ;;  %s881_s20 = smov 4  }
 0x17a   : > { %649 = dma.vmem_to_hbm [thread:$0]  (%p1074_p4), %s480_s9, 256, %s1121_s3, [#allocation5], %s880_s11, %s880_s11, %s881_s20  }
 0x17b   : > { %847 = dma.done.wait (%p1074_p4), [#allocation5], 256  }
 0x17c   : > { %849 = vsyncadd (%p1074_p4), [#allocation5], 4294967040 }
 0x17d PF: > { %s20_s17 = sadd.s32 1, %s872_s17   ;;  %s1129_s12 = smov %s856_s13 }
 0x17e   : > { %p17_p11 = scmp.ge.s32.totalorder %s20_s17, 5   ;;  %s1130_s13 = smov %s860_s14 }
 0x17f   : > { %s1131_s14 = smov %s953_s24  ;;  %s1132_s15 = smov %s868_s16 }
 0x180   : > { %s1133_s16 = smov %s1135_s19  ;;  %19 = sbr.rel (!%p17_p11) target bundleno = 7 (0x7), region = 94 }
 0x187   :  { %495 = vsyncpa [#allocation4], 1 }
 0x188   :  { %497 = vsyncpa [#allocation4 + $0x1], 1 }
 0x189   :  { %498 = vsyncpa [#allocation7], 1 }
 0x18a   :  { %500 = vsyncpa [#allocation7 + $0x1], 1 }
 0x18b   :  { %501 = vsyncpa [#allocation5], 1 }
 0x18c   :  { %503 = vsyncpa [#allocation5 + $0x1], 1 }

</bundles_post_ra>
